<compile_context>
chip_gen: v5e
topology: v5e:2x2
jax: 0.10.0
libtpu: 0.0.40
codegen_flags: <defaults>
</compile_context>

<pallas_src>
import functools

import jax
import jax.numpy as jnp
from jax.experimental import pallas as pl
from jax.experimental.pallas import tpu as pltpu

_LANE = 128


def _round_up(x, m):
    return (x + m - 1) // m * m


def _no_pad_tiling(S0, splits, cap_rows):
    """Largest spatial tile (in sublane rows) that divides S0/splits exactly.

    Returns (tile_rows, tiles_per_split) or None if no pad-free tiling exists.
    """
    if S0 % splits:
        return None
    per = S0 // splits
    if splits == 1 and per <= cap_rows:
        return per, 1                  # full-extent block: no (8,128) constraint
    best = 0
    limit = min(cap_rows, per)
    for ts in range(32, limit + 1, 32):   # 32-aligned: safe for f32/bf16/int8 blocks
        if per % ts == 0:
            best = ts
    if best == 0:
        return None
    return best, per // best


def _soft_iou_kernel(logits_ref, target_ref, out_ref, acc_ref, *,
                     mask_pad, exp_in_bf16):
    # logits_ref: (1, C, TS, 128) float (bf16 or f32)
    # target_ref: (1, TS, 128)    int8 / int32, -1 marks padded pixels
    # out_ref:    (1, 2, C, 128)  f32, row 0 = inter partials, row 1 = sum(pred)
    # acc_ref:    (2, C, 128)     f32 VMEM accumulator (lives across k axis)
    k = pl.program_id(1)

    @pl.when(k == 0)
    def _init():
        acc_ref[...] = jnp.zeros_like(acc_ref)

    # f32 math on all generations (v5e has no bf16 VPU/EUP); bf16 inputs only
    # halve the HBM stream.
    x = logits_ref[0].astype(jnp.float32)            # (C, TS, 128)
    t = target_ref[0].astype(jnp.int32)              # (TS, 128), stays integer

    # Channel softmax: C is a leading axis -> cross-vreg VALU max/sum/adds.
    m = jnp.max(x, axis=0, keepdims=True)            # (1, TS, 128)
    xm = x - m
    if exp_in_bf16:                                  # v6e/v7x EUP relief (opt-in)
        e = jnp.exp(xm.astype(jnp.bfloat16)).astype(jnp.float32)
    else:
        e = jnp.exp(xm)                              # EUP
    denom = jnp.sum(e, axis=0, keepdims=True)        # (1, TS, 128)
    pred = e * pl.reciprocal(denom, approx=True)     # EUP slot, ~free

    if mask_pad:
        # Only the padded fallback path reaches here; padded pixels carry -1 and
        # must contribute to neither inter nor sum(pred).
        valid = t >= 0                                # (TS, 128) bool
        pred = jnp.where(valid[None, :, :], pred, 0.0)

    # Integer one-hot select: iota compare along the (leading) class axis, no
    # float casts / multiplies.  The per-class pixel count (sum of the one-hot)
    # is target-only and is computed in the wrapper.
    cls = jax.lax.broadcasted_iota(jnp.int32, x.shape, 0)
    onehot = cls == t[None, :, :]                    # (C, TS, 128) bool
    inter_elem = jnp.where(onehot, pred, 0.0)

    # Per-tile partial reduction over the sublane axis only; the 128-lane
    # reduction is deferred to the JAX glue.
    acc_ref[0, :, :] += jnp.sum(inter_elem, axis=1)  # (C, 128)
    acc_ref[1, :, :] += jnp.sum(pred, axis=1)        # (C, 128)

    @pl.when(k == pl.num_programs(1) - 1)
    def _store():
        out_ref[0, :, :, :] = acc_ref[...]           # lane-dense, once per batch


def soft_iou_loss(logits, target, n_classes, *, tile_s=None, hw_splits=None,
                  exp_in_bf16=False):
    """SoftIoULoss forward.

    logits: (N, C, H, W) float32 or bfloat16, target: (N, H, W) integer.
    tile_s: optional cap / explicit spatial tile size in sublane rows (mult of 32).
    hw_splits: None = auto (2 on v7x-class chips when N == 1, else 1).
    """
    N, C, H, W = logits.shape
    assert C == n_classes
    HW = H * W

    # ---- per-generation VMEM budget -------------------------------------
    try:
        phys_vmem = int(pltpu.get_tpu_info().vmem_capacity_bytes)
        info_ok = True
    except Exception:
        phys_vmem = 64 << 20           # assume the tightest (v7x-class) budget
        info_ok = False
    small_vmem = phys_vmem <= (64 << 20)             # v7x: 64 MiB physical / TC
    buf_budget = 12 << 20                            # per logits buffer (x2 pipelined)
    vmem_limit = (40 << 20) if small_vmem else (64 << 20)

    itemsize = jnp.dtype(logits.dtype).itemsize
    row_bytes = C * _LANE * itemsize
    cap_rows = max(32, (buf_budget // row_bytes) // 32 * 32)
    if tile_s is not None:
        assert tile_s % 32 == 0, "tile_s must be a multiple of 32"
        cap_rows = tile_s

    if hw_splits is None:
        # v7x has 2 TensorCores sharing the "parallel" grid axis; with N == 1
        # one would otherwise idle.  On v5e/v6e (1 TC) splits are pure overhead.
        hw_splits = 2 if (info_ok and small_vmem and N == 1) else 1

    # ---- tiling: prefer pad-free configs (jnp.pad of logits = a full extra
    # HBM round-trip of the dominant stream) ------------------------------
    ts = tiles = None
    splits = 1
    pad_needed = True
    if HW % _LANE == 0:
        S0 = HW // _LANE
        for sp in ([hw_splits, 1] if hw_splits > 1 else [1]):
            cfg = _no_pad_tiling(S0, sp, cap_rows)
            if cfg is not None:
                ts, tiles = cfg
                splits = sp
                pad_needed = False
                break
    if pad_needed:
        # TODO(synk): replace this fallback with an overlapping last tile
        # (element-offset index_map clamped to S0 - ts plus an in-kernel iota
        # mask) so the logits pad copy disappears for every shape.
        S0 = int(pl.cdiv(HW, _LANE))
        splits = hw_splits if (hw_splits > 1 and S0 >= 32 * hw_splits) else 1
        ts = max(32, min(cap_rows, _round_up(int(pl.cdiv(S0, splits)), 32)))
        S = _round_up(S0, ts * splits)
        tiles = S // (ts * splits)
    else:
        S = S0
    HW_pad = S * _LANE

    # No dtype upcast in the wrapper: bf16 logits stay bf16 in HBM; targets are
    # narrowed to int8 when the class count allows it (labels assumed < C).
    tgt_dtype = jnp.int8 if n_classes <= 127 else jnp.int32
    logits_r = logits.reshape(N, C, HW)
    target_r = target.reshape(N, HW).astype(tgt_dtype)
    if HW_pad != HW:
        logits_r = jnp.pad(logits_r, ((0, 0), (0, 0), (0, HW_pad - HW)))
        target_r = jnp.pad(target_r, ((0, 0), (0, HW_pad - HW)),
                           constant_values=-1)
    logits_r = logits_r.reshape(N, C, S, _LANE)
    target_r = target_r.reshape(N, S, _LANE)

    if splits == 1:
        logits_map = lambda n, k: (n, 0, k, 0)
        target_map = lambda n, k: (n, k, 0)
    else:
        logits_map = lambda p, k: (p // splits, 0, (p % splits) * tiles + k, 0)
        target_map = lambda p, k: (p // splits, (p % splits) * tiles + k, 0)
    out_map = lambda p, k: (p, 0, 0, 0)

    # Raise the scoped-VMEM limit enough for the chosen blocks (v5e's default is
    # only 16 MiB); stay well below physical.
    need = (2 * (C * ts * _LANE * itemsize
                 + ts * _LANE * jnp.dtype(tgt_dtype).itemsize
                 + 2 * C * _LANE * 4)
            + 2 * C * _LANE * 4)
    vmem_limit = max(vmem_limit, int(need * 1.25) + (2 << 20))
    vmem_limit = min(vmem_limit, phys_vmem - (8 << 20))

    kernel = functools.partial(_soft_iou_kernel,
                               mask_pad=(HW_pad != HW),
                               exp_in_bf16=exp_in_bf16)

    sums = pl.pallas_call(
        kernel,
        out_shape=jax.ShapeDtypeStruct((N * splits, 2, C, _LANE), jnp.float32),
        grid_spec=pltpu.PrefetchScalarGridSpec(
            num_scalar_prefetch=0,
            grid=(N * splits, tiles),
            in_specs=[
                pl.BlockSpec((1, C, ts, _LANE), logits_map),
                pl.BlockSpec((1, ts, _LANE), target_map),
            ],
            out_specs=pl.BlockSpec((1, 2, C, _LANE), out_map),
            scratch_shapes=[pltpu.VMEM((2, C, _LANE), jnp.float32)],
        ),
        compiler_params=pltpu.CompilerParams(
            dimension_semantics=("parallel", "arbitrary"),
            vmem_limit_bytes=int(vmem_limit)),
    )(logits_r, target_r)

    # Tiny final reductions in plain JAX: fold hw-splits and the 128 lanes.
    sums = sums.reshape(N, splits, 2, C, _LANE).sum(axis=(1, 4))   # (N, 2, C)
    inter = sums[:, 0, :]
    pred_sum = sums[:, 1, :]
    # Per-class pixel counts depend only on the (C-times smaller) target stream;
    # a fused compare+reduce here lets the kernel drop the one-hot sum.
    cls_ids = jnp.arange(C, dtype=jnp.int32).reshape(1, C, 1)
    counts = jnp.sum(target.reshape(N, 1, HW).astype(jnp.int32) == cls_ids,
                     axis=-1).astype(jnp.float32)                  # (N, C)
    union = pred_sum + counts - inter
    return 1.0 - jnp.mean(inter / (union + 1e-16))


def _reference(logits, target, n_classes):
    pred = jax.nn.softmax(logits.astype(jnp.float32), axis=1)
    onehot = jax.nn.one_hot(target, n_classes, axis=1, dtype=jnp.float32)
    inter_elem = pred * onehot
    N = logits.shape[0]
    inter = inter_elem.reshape(N, n_classes, -1).sum(-1)
    union = (pred + onehot - inter_elem).reshape(N, n_classes, -1).sum(-1)
    return 1.0 - jnp.mean(inter / (union + 1e-16))


if __name__ == "__main__":
    key = jax.random.PRNGKey(0)
    k1, k2, k3, k4, k5, k6 = jax.random.split(key, 6)

    # Test 1: small f32 case (pad-free, single full-extent spatial block).
    N, C, H, W = 2, 4, 16, 16
    logits = jax.random.normal(k1, (N, C, H, W), dtype=jnp.float32)
    target = jax.random.randint(k2, (N, H, W), 0, C, dtype=jnp.int32)
    out = jax.block_until_ready(soft_iou_loss(logits, target, C))
    ref = jax.block_until_ready(_reference(logits, target, C))
    # Tolerance covers the approximate EUP reciprocal in the softmax denom.
    assert jnp.allclose(out, ref, atol=5e-4, rtol=0), (out, ref)

    # Test 2: bf16 logits / int8 targets, HW not 128-aligned -> padded fallback
    # path with in-kernel masking, explicit hw_splits and multi-tile accumulation.
    N2, C2, H2, W2 = 1, 21, 91, 91
    logits2 = jax.random.normal(
        k3, (N2, C2, H2, W2), dtype=jnp.float32).astype(jnp.bfloat16)
    target2 = jax.random.randint(k4, (N2, H2, W2), 0, C2, dtype=jnp.int32)
    out2 = jax.block_until_ready(
        soft_iou_loss(logits2, target2, C2, tile_s=32, hw_splits=2))
    ref2 = jax.block_until_ready(_reference(logits2, target2, C2))
    assert jnp.allclose(out2, ref2, atol=5e-4, rtol=0), (out2, ref2)

    # Test 3: pad-free divisor path with multiple spatial tiles and hw_splits=2
    # (N == 1): no jnp.pad, mask dropped at trace time, multi-step accumulation.
    N3, C3, H3, W3 = 1, 5, 128, 128
    logits3 = jax.random.normal(k5, (N3, C3, H3, W3), dtype=jnp.float32)
    target3 = jax.random.randint(k6, (N3, H3, W3), 0, C3, dtype=jnp.int32)
    out3 = jax.block_until_ready(
        soft_iou_loss(logits3, target3, C3, tile_s=32, hw_splits=2))
    ref3 = jax.block_until_ready(_reference(logits3, target3, C3))
    assert jnp.allclose(out3, ref3, atol=5e-4, rtol=0), (out3, ref3)

    print("KERNEL_OK")
</pallas_src>

<mosaic_0001>
module attributes {stable_mosaic.version = 11 : i64} {
  func.func @_soft_iou_kernel(%arg0: i32, %arg1: i32, %arg2: memref<1x4x2x128xf32, #tpu.memory_space<vmem>>, %arg3: memref<1x2x128xi8, #tpu.memory_space<vmem>>, %arg4: memref<1x2x4x128xf32, #tpu.memory_space<vmem>>, %arg5: memref<2x4x128xf32, #tpu.memory_space<vmem>>) attributes {dimension_semantics = [#tpu.dimension_semantics<parallel>, #tpu.dimension_semantics<arbitrary>], iteration_bounds = array<i64: 2, 1>, scalar_prefetch = 0 : i64, scratch_operands = 1 : i64, tpu.core_type = #tpu.core_type<tc>, window_params = [{transform_indices = @transform_0, window_bounds = array<i64: 1, 4, 2, 128>}, {transform_indices = @transform_1, window_bounds = array<i64: 1, 2, 128>}, {transform_indices = @transform_2, window_bounds = array<i64: 1, 2, 4, 128>}]} {
    %c0_i32 = arith.constant 0 : i32
    %0 = arith.cmpi eq, %arg1, %c0_i32 : i32
    %1 = arith.extui %0 : i1 to i32
    %c0_i32_0 = arith.constant 0 : i32
    %2 = arith.cmpi ne, %1, %c0_i32_0 : i32
    scf.if %2 {
      %cst_24 = arith.constant 0.000000e+00 : f32
      %41 = vector.broadcast %cst_24 : f32 to vector<2x4x128xf32>
      %c0_25 = arith.constant 0 : index
      %c0_26 = arith.constant 0 : index
      %c0_27 = arith.constant 0 : index
      %42 = vector.load %arg5[%c0_25, %c0_26, %c0_27] : memref<2x4x128xf32, #tpu.memory_space<vmem>>, vector<2x4x128xf32>
      tpu.vector_store %arg5[%c0_25, %c0_26, %c0_27], %41 {strides = array<i32>} : memref<2x4x128xf32, #tpu.memory_space<vmem>>, vector<2x4x128xf32>,
    } else {
    }
    %c0 = arith.constant 0 : index
    %c0_1 = arith.constant 0 : index
    %c0_2 = arith.constant 0 : index
    %c0_3 = arith.constant 0 : index
    %3 = vector.load %arg2[%c0, %c0_1, %c0_2, %c0_3] : memref<1x4x2x128xf32, #tpu.memory_space<vmem>>, vector<1x4x2x128xf32>
    %4 = vector.shape_cast %3 : vector<1x4x2x128xf32> to vector<4x2x128xf32>
    %c0_4 = arith.constant 0 : index
    %c0_5 = arith.constant 0 : index
    %c0_6 = arith.constant 0 : index
    %5 = vector.load %arg3[%c0_4, %c0_5, %c0_6] : memref<1x2x128xi8, #tpu.memory_space<vmem>>, vector<1x2x128xi8>
    %6 = vector.shape_cast %5 : vector<1x2x128xi8> to vector<2x128xi8>
    %7 = arith.extsi %6 : vector<2x128xi8> to vector<2x128xi32>
    %cst = arith.constant dense<0xFF800000> : vector<2x128xf32>
    %8 = vector.multi_reduction <maximumf>, %4, %cst [0] : vector<4x2x128xf32> to vector<2x128xf32>
    %9 = vector.shape_cast %8 : vector<2x128xf32> to vector<1x2x128xf32>
    %10 = vector.broadcast %9 : vector<1x2x128xf32> to vector<4x2x128xf32>
    %11 = arith.subf %4, %10 : vector<4x2x128xf32>
    %12 = math.exp %11 : vector<4x2x128xf32>
    %cst_7 = arith.constant dense<0.000000e+00> : vector<2x128xf32>
    %13 = vector.multi_reduction <add>, %12, %cst_7 [0] : vector<4x2x128xf32> to vector<2x128xf32>
    %14 = vector.shape_cast %13 : vector<2x128xf32> to vector<1x2x128xf32>
    %15 = tpu.reciprocal %14 {approx = true} : vector<1x2x128xf32> -> vector<1x2x128xf32>
    %16 = vector.broadcast %15 : vector<1x2x128xf32> to vector<4x2x128xf32>
    %17 = arith.mulf %12, %16 : vector<4x2x128xf32>
    %18 = tpu.iota {dimensions = array<i32: 0>} : vector<4x2x128xi32>
    %19 = vector.shape_cast %7 : vector<2x128xi32> to vector<1x2x128xi32>
    %20 = vector.broadcast %19 : vector<1x2x128xi32> to vector<4x2x128xi32>
    %21 = arith.cmpi eq, %18, %20 : vector<4x2x128xi32>
    %cst_8 = arith.constant 0.000000e+00 : f32
    %22 = vector.broadcast %cst_8 : f32 to vector<4x2x128xf32>
    %23 = arith.select %21, %17, %22 : vector<4x2x128xi1>, vector<4x2x128xf32>
    %c0_9 = arith.constant 0 : index
    %c0_10 = arith.constant 0 : index
    %c0_11 = arith.constant 0 : index
    %24 = vector.load %arg5[%c0_9, %c0_10, %c0_11] : memref<2x4x128xf32, #tpu.memory_space<vmem>>, vector<1x4x128xf32>
    %25 = vector.shape_cast %24 : vector<1x4x128xf32> to vector<4x128xf32>
    %cst_12 = arith.constant dense<0.000000e+00> : vector<4x128xf32>
    %26 = vector.multi_reduction <add>, %23, %cst_12 [1] : vector<4x2x128xf32> to vector<4x128xf32>
    %27 = arith.addf %25, %26 : vector<4x128xf32>
    %c0_13 = arith.constant 0 : index
    %c0_14 = arith.constant 0 : index
    %c0_15 = arith.constant 0 : index
    %28 = vector.load %arg5[%c0_13, %c0_14, %c0_15] : memref<2x4x128xf32, #tpu.memory_space<vmem>>, vector<1x4x128xf32>
    %29 = vector.shape_cast %28 : vector<1x4x128xf32> to vector<4x128xf32>
    %30 = vector.shape_cast %27 : vector<4x128xf32> to vector<1x4x128xf32>
    tpu.vector_store %arg5[%c0_13, %c0_14, %c0_15], %30 {strides = array<i32>} : memref<2x4x128xf32, #tpu.memory_space<vmem>>, vector<1x4x128xf32>,
    %c1 = arith.constant 1 : index
    %c0_16 = arith.constant 0 : index
    %c0_17 = arith.constant 0 : index
    %31 = vector.load %arg5[%c1, %c0_16, %c0_17] : memref<2x4x128xf32, #tpu.memory_space<vmem>>, vector<1x4x128xf32>
    %32 = vector.shape_cast %31 : vector<1x4x128xf32> to vector<4x128xf32>
    %cst_18 = arith.constant dense<0.000000e+00> : vector<4x128xf32>
    %33 = vector.multi_reduction <add>, %17, %cst_18 [1] : vector<4x2x128xf32> to vector<4x128xf32>
    %34 = arith.addf %32, %33 : vector<4x128xf32>
    %c1_19 = arith.constant 1 : index
    %c0_20 = arith.constant 0 : index
    %c0_21 = arith.constant 0 : index
    %35 = vector.load %arg5[%c1_19, %c0_20, %c0_21] : memref<2x4x128xf32, #tpu.memory_space<vmem>>, vector<1x4x128xf32>
    %36 = vector.shape_cast %35 : vector<1x4x128xf32> to vector<4x128xf32>
    %37 = vector.shape_cast %34 : vector<4x128xf32> to vector<1x4x128xf32>
    tpu.vector_store %arg5[%c1_19, %c0_20, %c0_21], %37 {strides = array<i32>} : memref<2x4x128xf32, #tpu.memory_space<vmem>>, vector<1x4x128xf32>,
    %c0_i32_22 = arith.constant 0 : i32
    %38 = arith.cmpi eq, %arg1, %c0_i32_22 : i32
    %39 = arith.extui %38 : i1 to i32
    %c0_i32_23 = arith.constant 0 : i32
    %40 = arith.cmpi ne, %39, %c0_i32_23 : i32
    scf.if %40 {
      %c0_24 = arith.constant 0 : index
      %c0_25 = arith.constant 0 : index
      %c0_26 = arith.constant 0 : index
      %41 = vector.load %arg5[%c0_24, %c0_25, %c0_26] : memref<2x4x128xf32, #tpu.memory_space<vmem>>, vector<2x4x128xf32>
      %c0_27 = arith.constant 0 : index
      %c0_28 = arith.constant 0 : index
      %c0_29 = arith.constant 0 : index
      %c0_30 = arith.constant 0 : index
      %42 = vector.load %arg4[%c0_27, %c0_28, %c0_29, %c0_30] : memref<1x2x4x128xf32, #tpu.memory_space<vmem>>, vector<1x2x4x128xf32>
      %43 = vector.shape_cast %42 : vector<1x2x4x128xf32> to vector<2x4x128xf32>
      %44 = vector.shape_cast %41 : vector<2x4x128xf32> to vector<1x2x4x128xf32>
      tpu.vector_store %arg4[%c0_27, %c0_28, %c0_29, %c0_30], %44 {strides = array<i32>} : memref<1x2x4x128xf32, #tpu.memory_space<vmem>>, vector<1x2x4x128xf32>,
    } else {
    }
    return
  }
  func.func @transform_0(%arg0: i32, %arg1: i32) -> (i32, i32, i32, i32) {
    %c0_i32 = arith.constant 0 : i32
    %c0_i32_0 = arith.constant 0 : i32
    %c0_i32_1 = arith.constant 0 : i32
    return %arg0, %c0_i32, %arg1, %c0_i32_0 : i32, i32, i32, i32
  }
  func.func @transform_1(%arg0: i32, %arg1: i32) -> (i32, i32, i32) {
    %c0_i32 = arith.constant 0 : i32
    %c0_i32_0 = arith.constant 0 : i32
    return %arg0, %arg1, %c0_i32 : i32, i32, i32
  }
  func.func @transform_2(%arg0: i32, %arg1: i32) -> (i32, i32, i32, i32) {
    %c0_i32 = arith.constant 0 : i32
    %c0_i32_0 = arith.constant 0 : i32
    %c0_i32_1 = arith.constant 0 : i32
    %c0_i32_2 = arith.constant 0 : i32
    return %arg0, %c0_i32, %c0_i32_0, %c0_i32_1 : i32, i32, i32, i32
  }
}

</mosaic_0001>

<bundles_post_ra>
// kernel: tpu_custom_call.1
= control target key start
LH: loop header
LB: loop body
LE: loop exit
PB: predicated region body
PF: predicated region fallthrough
CT: control target
= control target key end

     0   :  { %7 = vsyncpa [#allocation4], 0  ;;  %s910_s0 = inlined_call_operand.hbm [shape: f32[2,4,2,128], index: 0, kind: input, shape index: {}]   ;;  %s911_s1 = inlined_call_operand.hbm [shape: s8[2,2,128], index: 1, kind: input, shape index: {}]   ;;  %s912_s2 = inlined_call_operand.hbm [shape: f32[2,2,4,128], index: 2, kind: output, shape index: {}]  }
   0x1   :  { %9 = vsyncpa [#allocation4 + $0x1], 0 }
   0x2   :  { %10 = vsyncpa [#allocation7], 0 }
   0x3   :  { %12 = vsyncpa [#allocation7 + $0x1], 0 }
   0x4   :  { %13 = vsyncpa [#allocation5], 0 }
   0x5   :  { %15 = vsyncpa [#allocation5 + $0x1], 0  ;;  %s744_s9 = smov 0   ;;  %s746_s10 = smov 0  }
   0x6   :  { %s748_s11 = smov 0   ;;  %s750_s12 = smov 0  }
   0x7   :  { %s752_s13 = smov 0   ;;  %s754_s14 = smov 0  }
   0x8 LB: > { %s477_s15 = sadd.s32 4294967295, %s722_s14   ;;  %s478_s16 = sadd.s32 4294967294, %s722_s14   ;;  %s722_s14 = sphi %s754_s14, %s21_s14   ;;  %s718_s13 = sphi %s752_s13, %s922_s13   ;;  %s714_s12 = sphi %s750_s12, %s921_s12   ;;  %s710_s11 = sphi %s748_s11, %s920_s11   ;;  %s706_s10 = sphi %s746_s10, %s919_s10   ;;  %s702_s9 = sphi %s744_s9, %s918_s9  }
   0x9   : > { %s33_s17 = sadd.s32 1, %s718_s13  ;;  %s42_s18 = sadd.s32 1, %s710_s11 }
   0xa   : > { %p35_p0 = scmp.ge.s32.totalorder %s33_s17, 2  ;;  %p49_p1 = scmp.ne.s32.totalorder %s710_s11, %s706_s10 }
   0xb   : > { %p50_p2 = scmp.eq.s32.totalorder %s722_s14, 0  ;;  %p55_p3 = scmp.ne.s32.totalorder %s706_s10, %s702_s9 }
   0xc   : > { %s924_s17 = smov (%p35_p0, %s33_s17), 0  ;;  %p56_p5 = scmp.eq.s32.totalorder %s477_s15, 0 }
   0xd   : > { %p785_p4 = por %p50_p2, %p49_p1  ;;  %s37_s20 = ssub.s32 %s718_s13, %s924_s17 }
   0xe   : > { %p107_p6 = scmp.eq.s32.totalorder %s477_s15, 1  ;;  %p40_p7 = scmp.eq.s32.totalorder %s37_s20, 0 }
   0xf   : > { %p791_p8 = por %p56_p5, %p55_p3  ;;  %p113_p10 = scmp.eq.s32.totalorder %s478_s16, 1 }
  0x10   : > { %p795_p9 = por %p107_p6, %p49_p1  ;;  %p480_p12 = scmp.ge.s32.totalorder %s722_s14, 2 }
  0x11   : > { %s800_s23 = scalar_select %p40_p7, %s710_s11, %s42_s18  }
  0x12   : > { %p802_p11 = por %p113_p10, %p55_p3  ;;  %p511_p13 = scmp.lt.s32.totalorder %s722_s14, 2 }
  0x13   : > { %s133_s25 = sand.u32 1, %s710_s11   ;;  %s492_s27 = sshll.u32 %s718_s13, 3 }
  0x14   : > { %s481_s26 = sshll.u32 %s133_s25, 3  ;;  %s143_s30 = scalar_lea.hbm %s910_s0, %s492_s27 }
  0x15   : > { %s137_s3 = scalar_lea.vmem [#allocation3], %s481_s26  ;;  %s144_s5 = sshll.u32 %s143_s30, 4  ;;  %s145_s5 = int_to_ptr.hbm [resolvable:$true] %s144_s5 }
  0x16   : > { %s146_s4 = sshll.u32 %s137_s3, 4  ;;  %p815_p0 = pnand %p511_p13, %p785_p4  ;;  %s147_s4 = int_to_ptr.vmem [resolvable:$true] %s146_s4 }
  0x17   : > { %p484_p1 = scmp.ge.s32.totalorder %s722_s14, 1  ;;  %s134_s7 = scalar_lea.sflag [#allocation4], %s133_s25 }
  0x18   : > { %s724_s8 = smov 32   ;;  %s725_s15 = smov 2  }
  0x19   : > { %503 = dma.hbm_to_vmem [thread:$0]  (!%p815_p0), %s145_s5, 128, %s147_s4, %s134_s7, %s724_s8, %s724_s8, %s725_s15  }
  0x1a   : > { %p172_p2 = scmp.lt.s32.totalorder %s722_s14, 3  ;;  %s163_s20 = scalar_lea.hbm %s911_s1, %s718_s13 }
  0x1b   : > { %s165_s26 = sshll.u32 %s163_s20, 4  ;;  %s159_s19 = scalar_lea.vmem [#allocation6], %s133_s25  ;;  %s166_s26 = int_to_ptr.hbm [resolvable:$true] %s165_s26 }
  0x1c   : > { %p173_p3 = pnand %p484_p1, %p172_p2  ;;  %s167_s27 = sshll.u32 %s159_s19, 4  ;;  %s168_s27 = int_to_ptr.vmem [resolvable:$true] %s167_s27 }
  0x1d   : > { %s157_s28 = scalar_lea.sflag [#allocation7], %s133_s25  ;;  %s830_s29 = sand.u32 (!%p173_p3), 1, %s706_s10  }
  0x1e   : > { %506 = dma.hbm_to_vmem [thread:$0]  (!%p815_p0), %s166_s26, 16, %s168_s27, %s157_s28  }
  0x1f   : > { %176 = sbr.rel (%p173_p3) target bundleno = 109 (0x6d), region = 28  ;;  %s485_s30 = sshll.u32 (!%p173_p3), %s830_s29, 3 }
  0x20   : > { %s179_s3 = scalar_lea.sflag (!%p173_p3), [#allocation4], %s830_s29  ;;  %s182_s4 = scalar_lea.vmem (!%p173_p3), [#allocation3], %s485_s30 }
  0x24   : > { %689 = dma.done.wait (%p791_p8), %s179_s3, 128  }
  0x25   : > { %691 = vsyncadd (%p791_p8), %s179_s3, 4294967168  ;;  %s189_s25 = scalar_lea.sflag [#allocation7], %s830_s29  ;;  %s191_s5 = scalar_lea.vmem [#allocation6], %s830_s29 }
  0x26   : > { %693 = dma.done.wait (%p791_p8), %s189_s25, 16  }
  0x27   : > { %695 = vsyncadd (%p791_p8), %s189_s25, 4294967280  ;;  %v726_v0 = vmov 0.0   ;;  %vm229_vm0 = vcmask 1041408   ;;  %v223_v1 = vld [vmem:[%s182_s4] sm:$0x3]  ;;  %vm302_vm5 = vcmask 1041409  }
  0x28   : > { %221 = vst [vmem:[#allocation2] sm:$0xf] %v726_v0  ;;  %v224_v2 = vld [vmem:[%s182_s4 + $0x2] sm:$0x3]  ;;  %v225_v3 = vld [vmem:[%s182_s4 + $0x4] sm:$0x3] }
  0x29   : > { %222 = vst [vmem:[#allocation2 + $0x4] sm:$0xf] %v726_v0  ;;  %v226_v4 = vld [vmem:[%s182_s4 + $0x6] sm:$0x3]  ;;  %v230_v5 = vsel %vm229_vm0, %v223_v1, -inf  ;;  %v231_v6 = vsel %vm229_vm0, %v224_v2, -inf }
  0x2a   : > { %v232_v7 = vsel %vm229_vm0, %v225_v3, -inf  ;;  %v233_v8 = vsel %vm229_vm0, %v226_v4, -inf  ;;  %v234_v9 = vmax.f32 %v230_v5, %v231_v6  ;;  %v227_v31 = vld [vmem:[%s191_s5] sm:$0x1]  ;;  %vm304_vm6 = vcmask 1042434   ;;  %s493_s21 = sshll.u32 %s714_s12, 3 }
  0x2b   : > { %v235_v10 = vmax.f32 %v232_v7, %v233_v8  ;;  %v228_v32 = vunpack.c.0.s8 %v227_v31  ;;  %vm306_vm7 = vcmask 1043459   ;;  %s370_s8 = scalar_lea.hbm %s912_s2, %s493_s21  ;;  %s216_s15 = scalar_lea.vmem [#allocation8], %s485_s30 }
  0x2c   : > { %s371_s16 = sshll.u32 %s216_s15, 4  ;;  %s373_s18 = sshll.u32 %s370_s8, 4  ;;  %s372_s16 = int_to_ptr.vmem [resolvable:$true] %s371_s16  ;;  %s374_s18 = int_to_ptr.hbm [resolvable:$true] %s373_s18 }
  0x2d   : > { %v236_v11 = vmax.f32 %v234_v9, %v235_v10  ;;  %vm261_vm1 = vcmp.eq.s32.totalorder %v228_v32, 0  ;;  %vm262_vm2 = vcmp.eq.s32.totalorder %v228_v32, 1  ;;  %vm263_vm3 = vcmp.eq.s32.totalorder %v228_v32, 2  ;;  %s359_s20 = scalar_lea.sflag [#allocation5], %s830_s29  ;;  %s650_s26 = sshra.s32 %s374_s18, 4  ;;  %s651_s26 = int_to_ptr.hbm [resolvable:$true] %s650_s26 }
  0x2e   : > { %vm264_vm4 = vcmp.eq.s32.totalorder %v228_v32, 3  ;;  %s652_s19 = scalar_lea.hbm %s651_s26, 8  ;;  %s656_s28 = scalar_lea.hbm %s912_s2, 16 }
  0x2f   : > { %v237_v12 = vsub.f32 %v223_v1, %v236_v11  ;;  %v238_v13 = vsub.f32 %v224_v2, %v236_v11  ;;  %v239_v14 = vsub.f32 %v225_v3, %v236_v11  ;;  %v240_v15 = vsub.f32 %v226_v4, %v236_v11  ;;  %p653_p4 = scmp.ne.s32.totalorder %s651_s26, %s652_s19  ;;  %p657_p7 = scmp.lt.s32.totalorder %s651_s26, %s912_s2 }
  0x30   : > { %p658_p8 = scmp.lt.s32.totalorder %s656_s28, %s652_s19 }
  0x31   : > { %v241_v16 = vmul.f32 1.442695, %v237_v12  ;;  %v243_v17 = vmul.f32 1.442695, %v238_v13  ;;  %v245_v18 = vmul.f32 1.442695, %v239_v14  ;;  %p654_p5 = pnand %p653_p4, %p795_p9 }
  0x32   : > { %v247_v19 = vmul.f32 1.442695, %v240_v15  ;;  %p659_p10 = por %p658_p8, %p657_p7 }
  0x33   : > { %566 = vpow2.f32 %v241_v16  ;;  %p655_p6 = pneg %p654_p5 }
  0x34   : > { %568 = vpow2.f32 %v243_v17 }
  0x35   : > { %570 = vpow2.f32 %v245_v18  ;;  %p660_p13 = pnand %p659_p10, %p655_p6 }
  0x36   : > { %572 = vpow2.f32 %v247_v19 }
  0x39   : > { %v567_v20 = vpop.eup %566 }
  0x3a   : > { %v569_v21 = vpop.eup %568  ;;  %v249_v22 = vsel %vm229_vm0, %v567_v20, 0.0 }
  0x3b   : > { %v571_v23 = vpop.eup %570  ;;  %v250_v24 = vsel %vm229_vm0, %v569_v21, 0.0 }
  0x3c   : > { %v573_v25 = vpop.eup %572  ;;  %v251_v26 = vadd.f32 %v250_v24, %v249_v22  ;;  %v252_v27 = vsel %vm229_vm0, %v571_v23, 0.0 }
  0x3d   : > { %v254_v28 = vsel %vm229_vm0, %v573_v25, 0.0 }
  0x3e   : > { %v253_v29 = vadd.f32 %v252_v27, %v251_v26 }
  0x40   : > { %v255_v30 = vadd.f32 %v254_v28, %v253_v29 }
  0x42   : > { %574 = vrcp.f32 %v255_v30  ;;  %v269_v30 = vld [vmem:[#allocation2] sm:$0xf] }
  0x48   : > { %v575_v33 = vpop.eup %574 }
  0x49   : > { %v257_v34 = vmul.f32 %v575_v33, %v567_v20  ;;  %v258_v35 = vmul.f32 %v575_v33, %v569_v21  ;;  %v259_v36 = vmul.f32 %v575_v33, %v571_v23  ;;  %v260_v37 = vmul.f32 %v575_v33, %v573_v25 }
  0x4b   : > { %v265_v38 = vsel %vm261_vm1, %v257_v34, 0.0  ;;  %v266_v39 = vsel %vm262_vm2, %v258_v35, 0.0  ;;  %v267_v40 = vsel %vm263_vm3, %v259_v36, 0.0  ;;  %v268_v41 = vsel %vm264_vm4, %v260_v37, 0.0 }
  0x4c   : > { %v270_v42 = vsel %vm229_vm0, %v265_v38, 0.0  ;;  %v277_v43 = vsel %vm229_vm0, %v266_v39, 0.0  ;;  %v284_v44 = vsel %vm229_vm0, %v267_v40, 0.0  ;;  %v291_v45 = vsel %vm229_vm0, %v268_v41, 0.0  ;;  %v312_v39 = vld [vmem:[#allocation2 + $0x4] sm:$0xf] }
  0x4d   : > { %v271_v46 = vrot.slane %v270_v42, 4  ;;  %v278_v47 = vrot.slane %v277_v43, 4  ;;  %v285_v48 = vrot.slane %v284_v44, 4  ;;  %v292_v49 = vrot.slane %v291_v45, 4 }
  0x4e   : > { %v313_v50 = vsel %vm229_vm0, %v257_v34, 0.0  ;;  %v320_v51 = vsel %vm229_vm0, %v258_v35, 0.0  ;;  %v327_v52 = vsel %vm229_vm0, %v259_v36, 0.0  ;;  %v334_v53 = vsel %vm229_vm0, %v260_v37, 0.0 }
  0x4f   : > { %v272_v54 = vadd.f32 %v271_v46, %v270_v42  ;;  %v279_v55 = vadd.f32 %v278_v47, %v277_v43  ;;  %v286_v56 = vadd.f32 %v285_v48, %v284_v44  ;;  %v293_v57 = vadd.f32 %v292_v49, %v291_v45 }
  0x50   : > { %v314_v58 = vrot.slane %v313_v50, 4  ;;  %v321_v59 = vrot.slane %v320_v51, 4  ;;  %v328_v60 = vrot.slane %v327_v52, 4  ;;  %v335_v61 = vrot.slane %v334_v53, 4 }
  0x51   : > { %v273_v62 = vrot.slane %v272_v54, 2  ;;  %v280_v63 = vrot.slane %v279_v55, 2  ;;  %v287_v0 = vrot.slane %v286_v56, 2  ;;  %v294_v1 = vrot.slane %v293_v57, 2 }
  0x52   : > { %v315_v2 = vadd.f32 %v314_v58, %v313_v50  ;;  %v322_v3 = vadd.f32 %v321_v59, %v320_v51  ;;  %v329_v4 = vadd.f32 %v328_v60, %v327_v52  ;;  %v336_v5 = vadd.f32 %v335_v61, %v334_v53 }
  0x53   : > { %v274_v6 = vadd.f32 %v273_v62, %v272_v54  ;;  %v281_v7 = vadd.f32 %v280_v63, %v279_v55  ;;  %v288_v8 = vadd.f32 %v287_v0, %v286_v56  ;;  %v295_v9 = vadd.f32 %v294_v1, %v293_v57 }
  0x54   : > { %v316_v10 = vrot.slane %v315_v2, 2  ;;  %v323_v11 = vrot.slane %v322_v3, 2  ;;  %v330_v12 = vrot.slane %v329_v4, 2  ;;  %v337_v13 = vrot.slane %v336_v5, 2 }
  0x55   : > { %v275_v14 = vrot.slane %v274_v6, 1  ;;  %v282_v15 = vrot.slane %v281_v7, 1  ;;  %v289_v16 = vrot.slane %v288_v8, 1  ;;  %v296_v17 = vrot.slane %v295_v9, 1 }
  0x56   : > { %v317_v18 = vadd.f32 %v316_v10, %v315_v2  ;;  %v324_v19 = vadd.f32 %v323_v11, %v322_v3  ;;  %v331_v20 = vadd.f32 %v330_v12, %v329_v4  ;;  %v338_v21 = vadd.f32 %v337_v13, %v336_v5 }
  0x57   : > { %v276_v22 = vadd.f32 %v275_v14, %v274_v6  ;;  %v283_v23 = vadd.f32 %v282_v15, %v281_v7  ;;  %v290_v24 = vadd.f32 %v289_v16, %v288_v8  ;;  %v297_v25 = vadd.f32 %v296_v17, %v295_v9 }
  0x58   : > { %v318_v26 = vrot.slane %v317_v18, 1  ;;  %v325_v27 = vrot.slane %v324_v19, 1  ;;  %v332_v28 = vrot.slane %v331_v20, 1  ;;  %v339_v29 = vrot.slane %v338_v21, 1 }
  0x59   : > { %v303_v31 = vsel %vm302_vm5, %v283_v23, %v276_v22 }
  0x5a   : > { %v305_v32 = vsel %vm304_vm6, %v290_v24, %v303_v31  ;;  %v319_v33 = vadd.f32 %v318_v26, %v317_v18  ;;  %v326_v34 = vadd.f32 %v325_v27, %v324_v19  ;;  %v333_v35 = vadd.f32 %v332_v28, %v331_v20 }
  0x5b   : > { %v307_v36 = vsel %vm306_vm7, %v297_v25, %v305_v32  ;;  %v340_v37 = vadd.f32 %v339_v29, %v338_v21 }
  0x5c   : > { %v309_v38 = vadd.f32 %v307_v36, %v269_v30  ;;  %v345_v40 = vsel %vm302_vm5, %v326_v34, %v319_v33 }
  0x5d   : > { %v346_v41 = vsel %vm304_vm6, %v333_v35, %v345_v40 }
  0x5e   : > { %310 = vst [vmem:[#allocation2] sm:$0xf] %v309_v38  ;;  %v347_v42 = vsel %vm306_vm7, %v340_v37, %v346_v41 }
  0x5f   : > { %v349_v43 = vadd.f32 %v347_v42, %v312_v39 }
  0x61   : > { %350 = vst [vmem:[#allocation2 + $0x4] sm:$0xf] %v349_v43 }
  0x68   : > { %v354_v44 = vld [vmem:[#allocation2] sm:$0xff]  }
  0x69   : > { %356 = vst [vmem:[%s216_s15] sm:$0xff] %v354_v44  }
  0x6a   : > { %663 = shalt.err (!%p660_p13)
}
  0x6b   : > { %s727_s29 = smov 64   ;;  %s728_s4 = smov 4  }
  0x6c   : > { %498 = dma.vmem_to_hbm [thread:$0]  (%p795_p9), %s372_s16, 128, %s374_s18, %s359_s20, %s727_s29, %s727_s29, %s728_s4  }
  0x6d PF: > { %s388_s25 = sand.u32 1, %s702_s9   ;;  %p508_p0 = pnand %p480_p12, %p802_p11 }
  0x6e   : > { %s389_s5 = scalar_lea.sflag [#allocation5], %s388_s25 }
  0x6f   : > { %p509_p1 = pneg %p508_p0 }
  0x71   : > { %697 = dma.done.wait (%p509_p1), %s389_s5, 128  }
  0x72   : > { %699 = vsyncadd (%p509_p1), %s389_s5, 4294967168  ;;  %s21_s14 = sadd.s32 1, %s722_s14   ;;  %s918_s9 = smov %s706_s10 }
  0x73   : > { %p18_p2 = scmp.ge.s32.totalorder %s21_s14, 4   ;;  %s919_s10 = smov %s710_s11 }
  0x74   : > { %s920_s11 = smov %s800_s23  ;;  %s921_s12 = smov %s718_s13 }
  0x75   : > { %s922_s13 = smov %s924_s17  ;;  %20 = sbr.rel (!%p18_p2) target bundleno = 8 (0x8), region = 95 }
  0x7a   :  { %395 = vsyncpa [#allocation4], 1 }
  0x7b   :  { %397 = vsyncpa [#allocation4 + $0x1], 1 }
  0x7c   :  { %398 = vsyncpa [#allocation7], 1 }
  0x7d   :  { %400 = vsyncpa [#allocation7 + $0x1], 1 }
  0x7e   :  { %401 = vsyncpa [#allocation5], 1 }
  0x7f   :  { %403 = vsyncpa [#allocation5 + $0x1], 1 }

</bundles_post_ra>
